<compile_context>
chip_gen: v7x
topology: tpu7x:2x2x1
jax: 0.10.0
libtpu: 0.0.40
codegen_flags: <defaults>
</compile_context>

<pallas_src>
import functools

import jax
import jax.numpy as jnp
from jax import lax
from jax.experimental import pallas as pl
from jax.experimental.pallas import tpu as pltpu


def _round_up(x: int, m: int) -> int:
    return ((x + m - 1) // m) * m


def _pdist_kernel(ei_ref, ej_ref, sqi_ref, sqj_ref, o_ref, *,
                  squared: bool, eps: float, tile_m: int, tile_n: int):
    """Computes one (tile_m, tile_n) tile of the pairwise-distance matrix.

    ei_ref : (tile_m, Dp) row block of embeddings (MXU dtype)        (VMEM)
    ej_ref : (tile_n, Dp) column block of embeddings (MXU dtype)     (VMEM)
    sqi_ref: (tile_m, 1)  precomputed squared row norms, f32         (VMEM)
    sqj_ref: (n_col_tiles, 1, tile_n) all squared col norms, f32     (VMEM, resident)
    o_ref  : (tile_m, tile_n) output tile, f32                       (VMEM)
    """
    i = pl.program_id(0)
    j = pl.program_id(1)

    # Column-norm slice for this tile: dynamic index on a leading (untiled)
    # axis of the fully resident norm array -> pure address arithmetic, no DMA.
    sqj = sqj_ref[j]                                      # (1, tile_n) f32

    # Gram tile on the MXU; contract last dim of both operands (no transpose
    # of the (tile_n, Dp) block is ever materialized). f32 accumulation.
    prod = lax.dot_general(
        ei_ref[...], ej_ref[...],
        dimension_numbers=(((1,), (1,)), ((), ())),
        preferred_element_type=jnp.float32)               # (tile_m, tile_n)

    res = sqi_ref[...] + sqj - 2.0 * prod
    res = jnp.maximum(res, eps)                           # clamp(min=eps)
    if not squared:
        res = jnp.sqrt(res)
    res = res.astype(o_ref.dtype)

    row_start = i * tile_m
    col_start = j * tile_n
    overlaps = jnp.logical_and(row_start < col_start + tile_n,
                               col_start < row_start + tile_m)

    # Single store per tile: fold the diagonal mask into the store on tiles
    # that intersect the global diagonal; plain store elsewhere (no RMW).
    @pl.when(overlaps)
    def _():
        row = row_start + lax.broadcasted_iota(jnp.int32, (tile_m, tile_n), 0)
        col = col_start + lax.broadcasted_iota(jnp.int32, (tile_m, tile_n), 1)
        o_ref[...] = jnp.where(row == col, jnp.zeros_like(res), res)

    @pl.when(jnp.logical_not(overlaps))
    def _():
        o_ref[...] = res


def pdist_pallas(e: jax.Array, squared: bool = False, eps: float = 1e-12,
                 tile_m: int = 256, tile_n: int = 512,
                 mxu_dtype=jnp.bfloat16) -> jax.Array:
    """Pallas equivalent of the PyTorch `pdist` helper.

    e         : (N, D) float embeddings.
    mxu_dtype : dtype fed to the MXU (default bf16 on all TPU generations).
                Norms, accumulation and the epilogue stay float32. Pass
                jnp.float32 (or None) for a full-precision Gram matrix.
    """
    n, d = e.shape
    assert tile_m % 8 == 0 and tile_n % 128 == 0

    # Shrink tiles for small batches so tiny N runs a single near-exact block
    # instead of padding up to a full 256x512 tile.
    tile_m = min(tile_m, _round_up(max(n, 1), 8))
    tile_n = min(tile_n, _round_up(max(n, 1), 128))

    d_pad = _round_up(max(d, 1), 128)
    # Decoupled row/column padding: waste is capped at (tile-1) per axis.
    n_rows = _round_up(max(n, 1), tile_m)
    n_cols = _round_up(max(n, 1), tile_n)
    n_col_tiles = n_cols // tile_n

    op_dtype = jnp.dtype(mxu_dtype) if mxu_dtype is not None else jnp.dtype(jnp.float32)

    e32 = e.astype(jnp.float32)
    # Exact f32 squared norms, computed once in the wrapper.
    sq = jnp.sum(e32 * e32, axis=1)                        # (n,)

    e_rows = jnp.pad(e32, ((0, n_rows - n), (0, d_pad - d))).astype(op_dtype)
    e_cols = jnp.pad(e32, ((0, n_cols - n), (0, d_pad - d))).astype(op_dtype)
    sq_row = jnp.pad(sq, (0, n_rows - n))[:, None]                       # (n_rows, 1)
    sq_col = jnp.pad(sq, (0, n_cols - n)).reshape(n_col_tiles, 1, tile_n)

    grid_m = n_rows // tile_m
    grid_n = n_col_tiles
    grid = (grid_m, grid_n)

    kernel = functools.partial(
        _pdist_kernel, squared=squared, eps=eps, tile_m=tile_m, tile_n=tile_n)

    esize = op_dtype.itemsize
    # VMEM budget: double-buffered row/col operand blocks + output tile,
    # plus the resident norm blocks. Keep within v7x's 64 MiB physical.
    vmem_need = (2 * (tile_m + tile_n) * d_pad * esize
                 + 2 * tile_m * tile_n * 4
                 + 2 * tile_m * 4
                 + n_cols * 4)
    vmem_limit = int(min(max(vmem_need + (8 << 20), 32 << 20), 64 << 20))

    # Bytes: row blocks read once per row pass (DMA elided across j), column
    # blocks re-streamed once per row-tile pass, plus norms and output writes.
    bytes_accessed = (n_rows * d_pad * esize
                      + grid_m * n_cols * d_pad * esize
                      + n_rows * 4 + n_cols * 4
                      + n_rows * n_cols * 4)
    cost = pl.CostEstimate(
        flops=2 * n_rows * n_cols * d_pad,
        transcendentals=0 if squared else n_rows * n_cols,
        bytes_accessed=bytes_accessed)

    out_pad = pl.pallas_call(
        kernel,
        out_shape=jax.ShapeDtypeStruct((n_rows, n_cols), jnp.float32),
        grid_spec=pltpu.PrefetchScalarGridSpec(
            num_scalar_prefetch=0,
            grid=grid,
            in_specs=[
                # Row block of e: index does not change across j -> DMA elided.
                pl.BlockSpec((tile_m, d_pad), lambda i, j: (i, 0)),
                # Column block of e.
                pl.BlockSpec((tile_n, d_pad), lambda i, j: (j, 0)),
                # Squared row norms (re-DMA only when i changes).
                pl.BlockSpec((tile_m, 1), lambda i, j: (i, 0)),
                # All squared column norms, fully VMEM-resident.
                pl.BlockSpec((n_col_tiles, 1, tile_n), lambda i, j: (0, 0, 0)),
            ],
            out_specs=pl.BlockSpec((tile_m, tile_n), lambda i, j: (i, j)),
        ),
        compiler_params=pltpu.CompilerParams(
            dimension_semantics=("parallel", "arbitrary"),
            vmem_limit_bytes=vmem_limit),
        cost_estimate=cost,
    )(e_rows, e_cols, sq_row, sq_col)

    return out_pad[:n, :n]


def pdist_reference(e: jax.Array, squared: bool = False,
                    eps: float = 1e-12) -> jax.Array:
    """Pure-JAX reference mirroring the PyTorch pdist semantics (f32)."""
    e = e.astype(jnp.float32)
    e_square = jnp.sum(e * e, axis=1)
    prod = jnp.dot(e, e.T, precision=jax.lax.Precision.HIGHEST)
    res = jnp.maximum(e_square[:, None] + e_square[None, :] - 2.0 * prod, eps)
    if not squared:
        res = jnp.sqrt(res)
    n = e.shape[0]
    res = res * (1.0 - jnp.eye(n, dtype=res.dtype))
    return res


class SamplerPallas:
    """Mirror of `_Sampler`: holds dist_func; forward is not implemented upstream."""

    def __init__(self, dist_func=pdist_pallas):
        self.dist_func = dist_func

    def forward(self, embeddings, labels):
        raise NotImplementedError


if __name__ == "__main__":
    key = jax.random.PRNGKey(0)
    N, D = 8, 32  # small: 8 samples, 32-dim embeddings
    embeddings = jax.random.normal(key, (N, D), dtype=jnp.float32)

    sampler = SamplerPallas()
    ref = pdist_reference(embeddings)

    # Default hot path: bf16 MXU operands, f32 norms/accumulation/epilogue.
    dist_bf16 = jax.block_until_ready(sampler.dist_func(embeddings))
    assert dist_bf16.shape == (N, N)
    err_bf16 = float(jnp.max(jnp.abs(dist_bf16 - ref)))
    assert jnp.allclose(dist_bf16, ref, atol=1e-1, rtol=5e-2), (
        f"bf16 max abs err {err_bf16}")

    # Full-precision MXU path (tight tolerance).
    dist_f32 = jax.block_until_ready(
        pdist_pallas(embeddings, mxu_dtype=jnp.float32))
    err_f32 = float(jnp.max(jnp.abs(dist_f32 - ref)))
    assert jnp.allclose(dist_f32, ref, atol=1e-3, rtol=1e-3), (
        f"f32 max abs err {err_f32}")

    # Squared variant (f32 operands).
    ref_sq = pdist_reference(embeddings, squared=True)
    dist_sq = jax.block_until_ready(
        pdist_pallas(embeddings, squared=True, mxu_dtype=jnp.float32))
    err_sq = float(jnp.max(jnp.abs(dist_sq - ref_sq)))
    assert jnp.allclose(dist_sq, ref_sq, atol=1e-3, rtol=1e-3), (
        f"squared max abs err {err_sq}")

    # Multi-tile grid: exercises diagonal masking across tiles, decoupled
    # row/column padding and the resident column-norm path.
    emb2 = jax.random.normal(jax.random.PRNGKey(0), (200, 64), dtype=jnp.float32)
    ref2 = pdist_reference(emb2)
    dist2 = jax.block_until_ready(
        pdist_pallas(emb2, tile_m=128, tile_n=128, mxu_dtype=jnp.float32))
    err2 = float(jnp.max(jnp.abs(dist2 - ref2)))
    assert jnp.allclose(dist2, ref2, atol=2e-3, rtol=2e-3), (
        f"multi-tile max abs err {err2}")

    print("KERNEL_OK")
</pallas_src>

<mosaic_0001>
module attributes {stable_mosaic.version = 11 : i64} {
  func.func @_pdist_kernel(%arg0: i32, %arg1: i32, %arg2: memref<8x128xbf16, #tpu.memory_space<vmem>>, %arg3: memref<128x128xbf16, #tpu.memory_space<vmem>>, %arg4: memref<8x1xf32, #tpu.memory_space<vmem>>, %arg5: memref<1x1x128xf32, #tpu.memory_space<vmem>>, %arg6: memref<8x128xf32, #tpu.memory_space<vmem>>) attributes {dimension_semantics = [#tpu.dimension_semantics<parallel>, #tpu.dimension_semantics<arbitrary>], iteration_bounds = array<i64: 1, 1>, scalar_prefetch = 0 : i64, scratch_operands = 0 : i64, tpu.core_type = #tpu.core_type<tc>, window_params = [{transform_indices = @transform_0, window_bounds = array<i64: 8, 128>}, {transform_indices = @transform_1, window_bounds = array<i64: 128, 128>}, {transform_indices = @transform_2, window_bounds = array<i64: 8, 1>}, {pipeline_mode = #tpu.pipeline_mode<synchronous>, transform_indices = @transform_3, window_bounds = array<i64: 1, 1, 128>}, {transform_indices = @transform_4, window_bounds = array<i64: 8, 128>}]} {
    %0 = arith.index_cast %arg1 : i32 to index
    %c0 = arith.constant 0 : index
    %c0_0 = arith.constant 0 : index
    %1 = vector.load %arg5[%0, %c0, %c0_0] : memref<1x1x128xf32, #tpu.memory_space<vmem>>, vector<1x1x128xf32>
    %2 = vector.shape_cast %1 : vector<1x1x128xf32> to vector<1x128xf32>
    %c0_1 = arith.constant 0 : index
    %c0_2 = arith.constant 0 : index
    %3 = vector.load %arg2[%c0_1, %c0_2] : memref<8x128xbf16, #tpu.memory_space<vmem>>, vector<8x128xbf16>
    %c0_3 = arith.constant 0 : index
    %c0_4 = arith.constant 0 : index
    %4 = vector.load %arg3[%c0_3, %c0_4] : memref<128x128xbf16, #tpu.memory_space<vmem>>, vector<128x128xbf16>
    %cst = arith.constant dense<0.000000e+00> : vector<8x128xf32>
    %5 = tpu.matmul %3, %4, %cst {dimension_numbers = #tpu.dot_dimension_numbers<[1], [1], [0], [0], [0, 0, 1, 0], [], []>} : vector<8x128xbf16>, vector<128x128xbf16>, vector<8x128xf32> -> vector<8x128xf32>
    %c0_5 = arith.constant 0 : index
    %c0_6 = arith.constant 0 : index
    %6 = vector.load %arg4[%c0_5, %c0_6] : memref<8x1xf32, #tpu.memory_space<vmem>>, vector<8x1xf32>
    %7 = vector.broadcast %6 : vector<8x1xf32> to vector<8x128xf32>
    %8 = vector.broadcast %2 : vector<1x128xf32> to vector<8x128xf32>
    %9 = arith.addf %7, %8 : vector<8x128xf32>
    %cst_7 = arith.constant 2.000000e+00 : f32
    %10 = vector.broadcast %cst_7 : f32 to vector<8x128xf32>
    %11 = arith.mulf %10, %5 : vector<8x128xf32>
    %12 = arith.subf %9, %11 : vector<8x128xf32>
    %cst_8 = arith.constant 9.99999996E-13 : f32
    %13 = vector.broadcast %cst_8 : f32 to vector<8x128xf32>
    %14 = arith.maximumf %12, %13 : vector<8x128xf32>
    %15 = math.sqrt %14 : vector<8x128xf32>
    %c8_i32 = arith.constant 8 : i32
    %16 = arith.muli %arg0, %c8_i32 : i32
    %c128_i32 = arith.constant 128 : i32
    %17 = arith.muli %arg1, %c128_i32 : i32
    %c128_i32_9 = arith.constant 128 : i32
    %18 = arith.addi %17, %c128_i32_9 : i32
    %19 = arith.cmpi slt, %16, %18 : i32
    %c8_i32_10 = arith.constant 8 : i32
    %20 = arith.addi %16, %c8_i32_10 : i32
    %21 = arith.cmpi slt, %17, %20 : i32
    %22 = arith.andi %19, %21 : i1
    %23 = arith.extui %22 : i1 to i32
    %c0_i32 = arith.constant 0 : i32
    %24 = arith.cmpi ne, %23, %c0_i32 : i32
    scf.if %24 {
      %28 = tpu.iota {dimensions = array<i32: 0>} : vector<8x128xi32>
      %29 = vector.broadcast %16 : i32 to vector<8x128xi32>
      %30 = arith.addi %29, %28 : vector<8x128xi32>
      %31 = tpu.iota {dimensions = array<i32: 1>} : vector<8x128xi32>
      %32 = vector.broadcast %17 : i32 to vector<8x128xi32>
      %33 = arith.addi %32, %31 : vector<8x128xi32>
      %34 = arith.cmpi eq, %30, %33 : vector<8x128xi32>
      %cst_12 = arith.constant 0.000000e+00 : f32
      %35 = vector.broadcast %cst_12 : f32 to vector<8x128xf32>
      %36 = arith.select %34, %35, %15 : vector<8x128xi1>, vector<8x128xf32>
      %c0_13 = arith.constant 0 : index
      %c0_14 = arith.constant 0 : index
      %37 = vector.load %arg6[%c0_13, %c0_14] : memref<8x128xf32, #tpu.memory_space<vmem>>, vector<8x128xf32>
      tpu.vector_store %arg6[%c0_13, %c0_14], %36 {strides = array<i32>} : memref<8x128xf32, #tpu.memory_space<vmem>>, vector<8x128xf32>,
    } else {
    }
    %true = arith.constant true
    %25 = arith.xori %22, %true : i1
    %26 = arith.extui %25 : i1 to i32
    %c0_i32_11 = arith.constant 0 : i32
    %27 = arith.cmpi ne, %26, %c0_i32_11 : i32
    scf.if %27 {
      %c0_12 = arith.constant 0 : index
      %c0_13 = arith.constant 0 : index
      %28 = vector.load %arg6[%c0_12, %c0_13] : memref<8x128xf32, #tpu.memory_space<vmem>>, vector<8x128xf32>
      tpu.vector_store %arg6[%c0_12, %c0_13], %15 {strides = array<i32>} : memref<8x128xf32, #tpu.memory_space<vmem>>, vector<8x128xf32>,
    } else {
    }
    return
  }
  func.func @transform_0(%arg0: i32, %arg1: i32) -> (i32, i32) {
    %c0_i32 = arith.constant 0 : i32
    %c0_i32_0 = arith.constant 0 : i32
    return %arg0, %c0_i32 : i32, i32
  }
  func.func @transform_1(%arg0: i32, %arg1: i32) -> (i32, i32) {
    %c0_i32 = arith.constant 0 : i32
    %c0_i32_0 = arith.constant 0 : i32
    return %arg1, %c0_i32 : i32, i32
  }
  func.func @transform_2(%arg0: i32, %arg1: i32) -> (i32, i32) {
    %c0_i32 = arith.constant 0 : i32
    %c0_i32_0 = arith.constant 0 : i32
    return %arg0, %c0_i32 : i32, i32
  }
  func.func @transform_3(%arg0: i32, %arg1: i32) -> (i32, i32, i32) {
    %c0_i32 = arith.constant 0 : i32
    %c0_i32_0 = arith.constant 0 : i32
    %c0_i32_1 = arith.constant 0 : i32
    %c0_i32_2 = arith.constant 0 : i32
    return %c0_i32, %c0_i32_0, %c0_i32_1 : i32, i32, i32
  }
  func.func @transform_4(%arg0: i32, %arg1: i32) -> (i32, i32) {
    %c0_i32 = arith.constant 0 : i32
    return %arg0, %arg1 : i32, i32
  }
}

</mosaic_0001>

<bundles_post_ra>
// kernel: tpu_custom_call.1
= control target key start
LH: loop header
LB: loop body
LE: loop exit
PB: predicated region body
PF: predicated region fallthrough
CT: control target
= control target key end

     0   :  { %9 = vsyncpa [#allocation3], 0  ;;  %s371_s0 = inlined_call_operand.vmem [shape: bf16[8,128], index: 0, kind: input, shape index: {}]   ;;  %s372_s1 = inlined_call_operand.hbm [shape: bf16[128,128], index: 1, kind: input, shape index: {}]   ;;  %s373_s2 = inlined_call_operand.vmem [shape: f32[8,1], index: 2, kind: input, shape index: {}]   ;;  %s374_s3 = inlined_call_operand.vmem [shape: f32[1,1,128], index: 3, kind: input, shape index: {}]   ;;  %s375_s4 = inlined_call_operand.hbm [shape: f32[8,128], index: 4, kind: output, shape index: {}]  }
   0x1   :  { %10 = vsyncpa [#allocation4], 0  ;;  %s306_s15 = smov [#allocation2]   ;;  %s258_s19 = scalar_lea.hbm %s372_s1, 1024 }
   0x2   :  { %s18_s16 = sshll.u32 %s306_s15, 4  ;;  %p259_p0 = scmp.ne.s32.totalorder %s372_s1, %s258_s19  ;;  %s19_s16 = int_to_ptr.vmem [resolvable:$true] %s18_s16 }
   0x3   :  { %p262_p1 = scmp.lt.u32.totalorder %s258_s19, %s372_s1 }
   0x5   :  { %p264_p2 = pnand %p262_p1, %p259_p0 }
   0x7   :  { %267 = shalt.err (!%p264_p2)
}
   0x8   :  { %s268_s24 = scalar_lea.vmem %s19_s16, 1024  ;;  %p273_p4 = scmp.lt.s32.totalorder %s19_s16, %s19_s16 }
   0x9   :  { %p269_p3 = scmp.ne.s32.totalorder %s19_s16, %s268_s24  ;;  %p274_p5 = scmp.lt.s32.totalorder %s268_s24, %s268_s24 }
   0xb   :  { %p275_p6 = por %p274_p5, %p273_p4 }
   0xd   :  { %p276_p7 = pnand %p275_p6, %p269_p3 }
   0xf   :  { %279 = shalt.err (!%p276_p7)
}
  0x10   :  { %s307_s25 = smov 64   ;;  %s308_s26 = smov 4  }
  0x11   :  { %24 = dma.hbm_to_vmem [thread:$0]  %s372_s1, 1024, %s19_s16, [#allocation3], %s307_s25, %s307_s25, %s308_s26  }
  0x12   :  { %302 = dma.done.wait [#allocation3], 1024  }
  0x13   :  { %303 = vsyncadd [#allocation3], 4294966272  ;;  %v309_v0 = vmov 0.0   ;;  %vm310_vm0 = vmmov 0   ;;  %v311_v1 = vmov 0   ;;  %v248_v2 = vld [vmem:[#allocation2] sm:$0xff]   ;;  %v172_v22 = vlaneseq }
  0x14   :  { %220 = vmatprep.subr.bf16.mxu0 %v309_v0  ;;  %236 = vmatprep.mubr.msk.bf16.mxu0 %vm310_vm0, %v309_v0  ;;  %v249_v3 = vld [vmem:[#allocation2 + $0x8] sm:$0xff]   ;;  %v139_v4 = vld [vmem:[%s373_s2] sm:$0xff]  ;;  %v250_v5 = vld [vmem:[#allocation2 + $0x10] sm:$0xff]  }
  0x15   :  { %247 = vset.pattern.permute.xlu0 %v311_v1  ;;  %221 = vmatpush3.bf16.xpose.msra.mxu0 %v248_v2  ;;  %v251_v6 = vld [vmem:[#allocation2 + $0x18] sm:$0xff]   ;;  %v252_v7 = vld [vmem:[#allocation2 + $0x20] sm:$0xff]   ;;  %v253_v8 = vld [vmem:[#allocation2 + $0x28] sm:$0xff]   ;;  %v173_v23 = vshrl.u32 %v172_v22, 7  ;;  %v177_v24 = vand.u32 127, %v172_v22 }
  0x16   :  { %222 = vmatprep.subr.bf16.mxu0 %v309_v0  ;;  %142 = vperm.xlu0 %247, %v139_v4   ;;  %v254_v9 = vld [vmem:[#allocation2 + $0x30] sm:$0xff]   ;;  %v255_v10 = vld [vmem:[#allocation2 + $0x38] sm:$0xff]   ;;  %v34_v11 = vld [vmem:[%s371_s0] sm:$0xf]  ;;  %s312_s0 = smov [#allocation5]  }
  0x17   :  { %v210_v13 = vld [vmem:[%s374_s3] ss:$0 sm:$0xff]  ;;  %s193_s7 = sshll.u32 %s312_s0, 4  ;;  %vm180_vm2 = vcmp.eq.s32.totalorder %v173_v23, %v177_v24  ;;  %s194_s7 = int_to_ptr.vmem [resolvable:$true] %s193_s7 }
  0x18   :  { %s280_s3 = scalar_lea.vmem %s194_s7, 128  ;;  %p285_p9 = scmp.lt.s32.totalorder %s194_s7, %s194_s7 }
  0x19   :  { %p281_p8 = scmp.ne.s32.totalorder %s194_s7, %s280_s3  ;;  %p286_p10 = scmp.lt.s32.totalorder %s280_s3, %s280_s3 }
  0x1b   :  { %p287_p11 = por %p286_p10, %p285_p9 }
  0x1d   :  { %223 = vmatpush3.bf16.xpose.msra.mxu0 %v249_v3  ;;  %p288_p12 = pnand %p287_p11, %p281_p8 }
  0x1e   :  { %224 = vmatprep.subr.bf16.mxu0 %v309_v0 }
  0x25   :  { %225 = vmatpush3.bf16.xpose.msra.mxu0 %v250_v5 }
  0x26   :  { %226 = vmatprep.subr.bf16.mxu0 %v309_v0 }
  0x2d   :  { %227 = vmatpush3.bf16.xpose.msra.mxu0 %v251_v6 }
  0x2e   :  { %228 = vmatprep.subr.bf16.mxu0 %v309_v0 }
  0x35   :  { %229 = vmatpush3.bf16.xpose.msra.mxu0 %v252_v7 }
  0x36   :  { %230 = vmatprep.subr.bf16.mxu0 %v309_v0 }
  0x3d   :  { %231 = vmatpush3.bf16.xpose.msra.mxu0 %v253_v8 }
  0x3e   :  { %232 = vmatprep.subr.bf16.mxu0 %v309_v0 }
  0x45   :  { %233 = vmatpush3.bf16.xpose.msra.mxu0 %v254_v9 }
  0x46   :  { %234 = vmatprep.subr.bf16.mxu0 %v309_v0 }
  0x4d   :  { %235 = vmatpush3.bf16.xpose.msra.mxu0 %v255_v10 }
  0x54   :  { %237 = vmatmul.mubr.bf16.vlgmr.msra.gmra.mrb[0].mxu0 %v34_v11 }
  0x95   :  { %v143_v12 = vpop.permute.xlu0 %142 }
  0x96   :  { %v151_v14 = vadd.f32 %v210_v13, %v143_v12 }
 0x127   :  { %v133_v15 = vpop.f32.mrb[0].mxu0 }
 0x128   :  { %v152_v16 = vmul.f32 2.0, %v133_v15  ;;  %v238_v17 = vpop.f32.mrb[1].mxu0 }
 0x129   :  { %v136_v18 = vpop.f32.mrb[2].mxu0 }
 0x12a   :  { %v153_v19 = vsub.f32 %v151_v14, %v152_v16  ;;  %v239_v20 = vpop.f32.mrb[3].mxu0 }
 0x12c   :  { %v154_v21 = vmax.f32 %v153_v19, 1e-12 }
 0x12e   :  { %256 = vrsqrt.f32 %v154_v21  ;;  %vm157_vm1 = vcmp.eq.f32.partialorder %v154_v21, inf  ;;  %v160_v27 = vand.u32 2147483648, %v154_v21  ;;  %vm159_vm3 = vcmp.eq.f32.partialorder %v154_v21, 0.0 }
 0x138   :  { %v257_v25 = vpop.eup %256 }
 0x139   :  { %v156_v26 = vmul.f32 %v257_v25, %v154_v21 }
 0x13b   :  { %v158_v28 = vsel %vm157_vm1, %v154_v21, %v156_v26 }
 0x13c   :  { %v161_v29 = vsel %vm159_vm3, %v160_v27, %v158_v28 }
 0x13d   :  { %v181_v30 = vsel %vm180_vm2, 0.0, %v161_v29 }
 0x13e   :  { %182 = vst [vmem:[#allocation5] sm:$0xff] %v181_v30 }
 0x13f   :  { %291 = shalt.err (!%p288_p12)
}
 0x140   :  { %s292_s10 = scalar_lea.hbm %s375_s4, 128 }
 0x141   :  { %p293_p13 = scmp.ne.s32.totalorder %s375_s4, %s292_s10  ;;  %p296_p0 = scmp.lt.u32.totalorder %s292_s10, %s375_s4 }
 0x143   :  { %p298_p1 = pnand %p296_p0, %p293_p13 }
 0x145   :  { %301 = shalt.err (!%p298_p1)
}
 0x146   :  { %196 = dma.vmem_to_hbm [thread:$0]  %s194_s7, 128, %s375_s4, [#allocation4]  }
 0x147   :  { %304 = dma.done.wait [#allocation4], 128  }
 0x148   :  { %305 = vsyncadd [#allocation4], 4294967168 }
 0x149   :  { %200 = vsyncpa [#allocation3], 1 }
 0x14a   :  { %201 = vsyncpa [#allocation4], 1 }

</bundles_post_ra>
